<compile_context>
chip_gen: v7x
topology: tpu7x:2x2x1
jax: 0.10.0
libtpu: 0.0.40
codegen_flags: <defaults>
</compile_context>

<pallas_src>
import functools

import jax
import jax.numpy as jnp
import numpy as np
from jax.experimental import pallas as pl
from jax.experimental.pallas import tpu as pltpu


# -----------------------------------------------------------------------------
# Fused kernel: one grid step = `bblk` batch elements, full forward pass.
# -----------------------------------------------------------------------------
def _fused_net_kernel(x_ref, wkv_ref, bkv_ref, e_ref, qflat_ref,
                      wo_ref, bo_ref, wl_ref, bl_ref, o_ref,
                      *, n_valid, lane_dense_out):
    bblk, n, chw = x_ref.shape
    d = wo_ref.shape[0]                  # dim_hidden
    mh = wkv_ref.shape[1] - d            # num_outputs * num_heads
    m = qflat_ref.shape[1] // d          # num_outputs (seed count)
    dim_out = wl_ref.shape[1]

    # --- ONE matmul produces both V and the attention logits.  GAP, prep
    #     projection, seed-Q and the 1/sqrt(D) scale are folded into the
    #     weight host-side.  Column layout: [ V (d lanes) | logits (mh lanes) ]
    x2 = x_ref[...].reshape(bblk * n, chw)                                # bf16
    kv = jnp.dot(x2, wkv_ref[...],
                 preferred_element_type=jnp.float32) + bkv_ref[...]      # f32
    v = kv[:, :d]                                                        # (bblk*n, d)
    logits = kv[:, d:]                                                   # (bblk*n, mh)

    # softmax over the set dimension n (sublane-direction reduce); padded set
    # rows (zeros in x) are masked out with -1e30 logits.
    lg = logits.reshape(bblk, n, mh)
    if n_valid < n:
        row = jax.lax.broadcasted_iota(jnp.int32, (1, n, 1), 1)
        lg = jnp.where(row < n_valid, lg, -1e30)
    lg = lg - jnp.max(lg, axis=1, keepdims=True)
    ex = jnp.exp(lg)
    attn = ex * pl.reciprocal(jnp.sum(ex, axis=1, keepdims=True), approx=True)

    # expand per-head attention weights to full hidden width with a constant
    # 0/1 matrix (one tiny bf16 matmul), then contract with V elementwise —
    # no per-head Python loop, no 8-lane slices, no concatenate.
    attn_full = jnp.dot(attn.reshape(bblk * n, mh).astype(jnp.bfloat16),
                        e_ref[...],
                        preferred_element_type=jnp.float32)              # (bblk*n, m*d)
    v_t = v if m == 1 else jnp.tile(v, (1, m))                           # (bblk*n, m*d)
    ctx = jnp.sum((attn_full * v_t).reshape(bblk, n, m * d), axis=1)     # (bblk, m*d)

    # O = Q + softmax(QK^T) V   (Q broadcast over batch), then rFF residual.
    o = (ctx + qflat_ref[...]).reshape(bblk * m, d)
    o = o + jnp.maximum(
        jnp.dot(o.astype(jnp.bfloat16), wo_ref[...],
                preferred_element_type=jnp.float32) + bo_ref[...], 0.0)

    # final Linear(dim_hidden -> dim_output)
    out = jnp.dot(o.astype(jnp.bfloat16), wl_ref[...],
                  preferred_element_type=jnp.float32) + bl_ref[...]      # (bblk*m, dim_out)

    if lane_dense_out:
        # lane-dense store: batch on the lane axis -> unmasked vst.
        o_ref[...] = out.reshape(bblk, m * dim_out).T                    # (m*dim_out, bblk)
    else:
        o_ref[...] = out.reshape(bblk, m, dim_out)


def _choose_batch_block(b, per_row_bytes, budget):
    """Largest divisor of b whose x-block fits the VMEM budget.  No forced
    grid split on single-TC chips; only split in two (for v7x's 2nd core)
    when the halves stay >= 1 MiB so per-step overhead stays amortized."""
    cap = max(1, budget // max(1, per_row_bytes))
    bblk = 1
    for cand in range(1, b + 1):
        if b % cand == 0 and cand <= cap:
            bblk = cand
    if bblk == b and b % 2 == 0 and (b // 2) * per_row_bytes >= (1 << 20):
        bblk = b // 2
    return bblk


# -----------------------------------------------------------------------------
# Wrapper: batch-invariant precompute (folds), casts, and the pallas_call.
# -----------------------------------------------------------------------------
def net_forward(x, params, *, num_heads, num_outputs, dim_output):
    B, N, C, H, W = x.shape
    (w_prep, b_prep, seeds, wq, bq, wk, bk, wv, bv, wo, bo, wl, bl) = params
    D = w_prep.shape[1]
    M = num_outputs
    Hn = num_heads
    dh = D // Hn
    HW = H * W
    CHW = C * HW
    MHn = M * Hn

    # ---- batch-invariant host-side precompute (all folds in f32, single
    # ---- bf16 cast at the end; tiny, constant-folded under jit) ----
    scale = 1.0 / np.sqrt(D)                      # Set-Transformer: 1/sqrt(dim_V)
    q = seeds @ wq + bq                                                   # (M, D) f32
    q_r = q.reshape(M, Hn, dh)
    # Fold Q (and scale) into the K projection: logits = feats @ wqk + bqk.
    wqk = (scale * jnp.einsum('chd,mhd->cmh', wk.reshape(D, Hn, dh), q_r)
           ).reshape(D, MHn)
    bqk = (scale * jnp.einsum('hd,mhd->mh', bk.reshape(Hn, dh), q_r)
           ).reshape(1, MHn)
    # Merge V + logits projections, then fold the prep projection and the GAP:
    #   kv = x2 @ W_kv_big + b_kv,  columns = [ V | logits ].
    w_feat2kv = jnp.concatenate([wv, wqk], axis=1)                        # (D, D+MHn)
    b_kv = (b_prep @ w_feat2kv
            + jnp.concatenate([bv, bqk], axis=1)).astype(jnp.float32)    # (1, D+MHn)
    w_kv_big = (jnp.repeat(w_prep @ w_feat2kv, HW, axis=0) / HW
                ).astype(jnp.bfloat16)                                    # (CHW, D+MHn)
    # Constant 0/1 head-expansion matrix (exact in bf16): (M*Hn, M*D).
    e_np = np.zeros((MHn, M * D), np.float32)
    for mm in range(M):
        for hh in range(Hn):
            e_np[mm * Hn + hh, mm * D + hh * dh: mm * D + (hh + 1) * dh] = 1.0
    e_mat = jnp.asarray(e_np, dtype=jnp.bfloat16)
    q_flat = q.reshape(1, M * D).astype(jnp.float32)

    # ---- pad the set dimension to a sublane multiple (8) so in-kernel
    # ---- reshapes are free views and the MXU operand has no masked rows ----
    N_pad = ((N + 7) // 8) * 8
    x3 = x.reshape(B, N, CHW)
    if N_pad != N:
        x3 = jnp.pad(x3, ((0, 0), (0, N_pad - N), (0, 0)))
    x3 = x3.astype(jnp.bfloat16)

    # ---- generation-aware batch-block / VMEM budgeting ----
    try:
        vmem_phys = int(pltpu.get_tpu_info().vmem_capacity_bytes)
    except Exception:
        vmem_phys = 64 << 20                       # conservative (v7x per-TC)
    per_row_bytes = N_pad * CHW * 2
    bblk = _choose_batch_block(B, per_row_bytes, vmem_phys // 8)
    grid = (B // bblk,)
    # lane-dense output needs bblk == B or bblk % 128 == 0 (block rule).
    lane_dense_out = (bblk == B) or (bblk % 128 == 0)

    weight_bytes = (int(w_kv_big.size) * 2 + int(e_mat.size) * 2
                    + int(wo.size) * 2 + int(wl.size) * 2
                    + (int(b_kv.size) + int(q_flat.size)
                       + int(bo.size) + int(bl.size)) * 4)
    x_block_bytes = bblk * per_row_bytes
    interm_bytes = bblk * N_pad * (D + MHn + M * D) * 4 * 3
    est = 2 * x_block_bytes + 2 * weight_bytes + interm_bytes + (1 << 20)
    vmem_limit = int(min(vmem_phys * 3 // 4, max(32 << 20, 2 * est)))

    flops = (2 * B * N_pad * CHW * (D + MHn)           # fused backbone/K/V matmul
             + 2 * B * N_pad * MHn * M * D             # head-expansion matmul
             + 2 * B * M * D * D                       # rFF
             + 2 * B * M * D * dim_output)             # final Linear
    bytes_accessed = int(x3.size) * 2 + weight_bytes + B * M * dim_output * 4
    cost = pl.CostEstimate(flops=flops, transcendentals=B * N_pad * MHn,
                           bytes_accessed=bytes_accessed)

    full2 = lambda i: (0, 0)
    in_specs = [
        pl.BlockSpec((bblk, N_pad, CHW), lambda i: (i, 0, 0)),    # x (batch block)
        pl.BlockSpec((CHW, D + MHn), full2),                      # W_kv (all folds)
        pl.BlockSpec((1, D + MHn), full2),                        # b_kv
        pl.BlockSpec((MHn, M * D), full2),                        # head-expansion E
        pl.BlockSpec((1, M * D), full2),                          # Q (flattened)
        pl.BlockSpec((D, D), full2),                              # Wo
        pl.BlockSpec((1, D), full2),                              # bo
        pl.BlockSpec((D, dim_output), full2),                     # W_linear
        pl.BlockSpec((1, dim_output), full2),                     # b_linear
    ]
    if lane_dense_out:
        out_shape = jax.ShapeDtypeStruct((M * dim_output, B), jnp.float32)
        out_specs = pl.BlockSpec((M * dim_output, bblk), lambda i: (0, i))
    else:
        out_shape = jax.ShapeDtypeStruct((B, M, dim_output), jnp.float32)
        out_specs = pl.BlockSpec((bblk, M, dim_output), lambda i: (i, 0, 0))

    kernel = functools.partial(_fused_net_kernel, n_valid=N,
                               lane_dense_out=lane_dense_out)

    raw = pl.pallas_call(
        kernel,
        out_shape=out_shape,
        grid=grid,
        in_specs=in_specs,
        out_specs=out_specs,
        compiler_params=pltpu.CompilerParams(
            dimension_semantics=("parallel",),
            vmem_limit_bytes=vmem_limit),
        cost_estimate=cost,
    )(x3, w_kv_big, b_kv, e_mat, q_flat,
      wo.astype(jnp.bfloat16), bo.astype(jnp.float32),
      wl.astype(jnp.bfloat16), bl.astype(jnp.float32))

    if lane_dense_out:
        out = raw.reshape(M, dim_output, B).transpose(2, 0, 1)    # (B, M, dim_out)
    else:
        out = raw
    # torch `.squeeze(2)` only squeezes when dim_output == 1.
    return out[..., 0] if dim_output == 1 else out


# -----------------------------------------------------------------------------
# Pure-JAX f32 reference (same math, un-fused) for a correctness check.
# -----------------------------------------------------------------------------
def net_reference(x, params, *, num_heads, num_outputs, dim_output):
    B, N, C, H, W = x.shape
    (w_prep, b_prep, seeds, wq, bq, wk, bk, wv, bv, wo, bo, wl, bl) = params
    D = w_prep.shape[1]
    dh = D // num_heads
    M = num_outputs

    gap = jnp.mean(x.reshape(B * N, C, H * W), axis=-1)
    feats = (gap @ w_prep + b_prep).reshape(B, N, D)

    q = seeds @ wq + bq                                        # (M, D)
    k = feats @ wk + bk
    v = feats @ wv + bv
    qh = q.reshape(M, num_heads, dh).transpose(1, 0, 2)        # (H, M, dh)
    kh = k.reshape(B, N, num_heads, dh).transpose(0, 2, 1, 3)  # (B, H, N, dh)
    vh = v.reshape(B, N, num_heads, dh).transpose(0, 2, 1, 3)
    logits = jnp.einsum('hmd,bhnd->bhmn', qh, kh) / jnp.sqrt(jnp.float32(D))
    attn = jax.nn.softmax(logits, axis=-1)
    oh = qh[None] + jnp.einsum('bhmn,bhnd->bhmd', attn, vh)
    o = oh.transpose(0, 2, 1, 3).reshape(B, M, D)
    o = o + jax.nn.relu(o @ wo + bo)
    out = o @ wl + bl                                          # (B, M, dim_output)
    return out[..., 0] if dim_output == 1 else out


if __name__ == "__main__":
    # Small shapes consistent with the module's forward.
    B, N, C, H, W = 2, 3, 4, 16, 16
    dim_input = dim_hidden = 32        # PMA requires dim_input == dim_hidden
    num_heads = 4
    num_outputs = 1
    dim_output = 1

    key = jax.random.PRNGKey(0)
    keys = jax.random.split(key, 16)
    x = jax.random.normal(keys[0], (B, N, C, H, W), dtype=jnp.float32)

    def init(k, shape, scale=0.1):
        return (scale * jax.random.normal(k, shape)).astype(jnp.float32)

    w_prep = init(keys[1], (C, dim_input))
    b_prep = init(keys[2], (1, dim_input))
    seeds = init(keys[3], (num_outputs, dim_hidden))           # PMA seed vectors
    wq, bq = init(keys[4], (dim_hidden, dim_hidden)), init(keys[5], (1, dim_hidden))
    wk, bk = init(keys[6], (dim_hidden, dim_hidden)), init(keys[7], (1, dim_hidden))
    wv, bv = init(keys[8], (dim_hidden, dim_hidden)), init(keys[9], (1, dim_hidden))
    wo, bo = init(keys[10], (dim_hidden, dim_hidden)), init(keys[11], (1, dim_hidden))
    wl, bl = init(keys[12], (dim_hidden, dim_output)), init(keys[13], (1, dim_output))

    params = (w_prep, b_prep, seeds, wq, bq, wk, bk, wv, bv, wo, bo, wl, bl)

    fwd = jax.jit(functools.partial(
        net_forward, num_heads=num_heads, num_outputs=num_outputs,
        dim_output=dim_output))
    out = jax.block_until_ready(fwd(x, params))

    ref = jax.block_until_ready(net_reference(
        x, params, num_heads=num_heads, num_outputs=num_outputs,
        dim_output=dim_output))

    assert out.shape == (B, num_outputs), out.shape
    # bf16 MXU inputs with f32 accumulation -> modest tolerance vs f32 reference.
    np.testing.assert_allclose(np.asarray(out), np.asarray(ref),
                               rtol=5e-2, atol=5e-3)
    print("KERNEL_OK")
</pallas_src>

<mosaic_0001>
module attributes {stable_mosaic.version = 11 : i64} {
  func.func @_fused_net_kernel(%arg0: i32, %arg1: memref<2x8x1024xbf16, #tpu.memory_space<vmem>>, %arg2: memref<1024x36xbf16, #tpu.memory_space<vmem>>, %arg3: memref<1x36xf32, #tpu.memory_space<vmem>>, %arg4: memref<4x32xbf16, #tpu.memory_space<vmem>>, %arg5: memref<1x32xf32, #tpu.memory_space<vmem>>, %arg6: memref<32x32xbf16, #tpu.memory_space<vmem>>, %arg7: memref<1x32xf32, #tpu.memory_space<vmem>>, %arg8: memref<32x1xbf16, #tpu.memory_space<vmem>>, %arg9: memref<1x1xf32, #tpu.memory_space<vmem>>, %arg10: memref<1x2xf32, #tpu.memory_space<vmem>>) attributes {dimension_semantics = [#tpu.dimension_semantics<parallel>], iteration_bounds = array<i64: 1>, scalar_prefetch = 0 : i64, scratch_operands = 0 : i64, tpu.core_type = #tpu.core_type<tc>, window_params = [{transform_indices = @transform_0, window_bounds = array<i64: 2, 8, 1024>}, {pipeline_mode = #tpu.pipeline_mode<synchronous>, transform_indices = @transform_1, window_bounds = array<i64: 1024, 36>}, {pipeline_mode = #tpu.pipeline_mode<synchronous>, transform_indices = @transform_2, window_bounds = array<i64: 1, 36>}, {pipeline_mode = #tpu.pipeline_mode<synchronous>, transform_indices = @transform_3, window_bounds = array<i64: 4, 32>}, {pipeline_mode = #tpu.pipeline_mode<synchronous>, transform_indices = @transform_4, window_bounds = array<i64: 1, 32>}, {pipeline_mode = #tpu.pipeline_mode<synchronous>, transform_indices = @transform_5, window_bounds = array<i64: 32, 32>}, {pipeline_mode = #tpu.pipeline_mode<synchronous>, transform_indices = @transform_6, window_bounds = array<i64: 1, 32>}, {pipeline_mode = #tpu.pipeline_mode<synchronous>, transform_indices = @transform_7, window_bounds = array<i64: 32, 1>}, {pipeline_mode = #tpu.pipeline_mode<synchronous>, transform_indices = @transform_8, window_bounds = array<i64: 1, 1>}, {transform_indices = @transform_9, window_bounds = array<i64: 1, 2>}]} {
    %c0 = arith.constant 0 : index
    %c0_0 = arith.constant 0 : index
    %c0_1 = arith.constant 0 : index
    %0 = vector.load %arg1[%c0, %c0_0, %c0_1] : memref<2x8x1024xbf16, #tpu.memory_space<vmem>>, vector<2x8x1024xbf16>
    %1 = vector.shape_cast %0 : vector<2x8x1024xbf16> to vector<16x1024xbf16>
    %c0_2 = arith.constant 0 : index
    %c0_3 = arith.constant 0 : index
    %2 = vector.load %arg2[%c0_2, %c0_3] : memref<1024x36xbf16, #tpu.memory_space<vmem>>, vector<1024x36xbf16>
    %cst = arith.constant dense<0.000000e+00> : vector<16x36xf32>
    %3 = tpu.matmul %1, %2, %cst {dimension_numbers = #tpu.dot_dimension_numbers<[1], [0], [0], [1], [0, 0, 1, 1], [], []>} : vector<16x1024xbf16>, vector<1024x36xbf16>, vector<16x36xf32> -> vector<16x36xf32>
    %c0_4 = arith.constant 0 : index
    %c0_5 = arith.constant 0 : index
    %4 = vector.load %arg3[%c0_4, %c0_5] : memref<1x36xf32, #tpu.memory_space<vmem>>, vector<1x36xf32>
    %5 = vector.broadcast %4 : vector<1x36xf32> to vector<16x36xf32>
    %6 = arith.addf %3, %5 : vector<16x36xf32>
    %7 = vector.extract_strided_slice %6 {offsets = [0, 0], sizes = [16, 32], strides = [1, 1]} : vector<16x36xf32> to vector<16x32xf32>
    %8 = vector.extract_strided_slice %6 {offsets = [0, 32], sizes = [16, 4], strides = [1, 1]} : vector<16x36xf32> to vector<16x4xf32>
    %9 = vector.shape_cast %8 : vector<16x4xf32> to vector<2x8x4xf32>
    %10 = tpu.iota {dimensions = array<i32: 1>} : vector<1x8x1xi32>
    %c3_i32 = arith.constant 3 : i32
    %11 = vector.broadcast %c3_i32 : i32 to vector<1x8x1xi32>
    %12 = arith.cmpi slt, %10, %11 : vector<1x8x1xi32>
    %cst_6 = arith.constant -1.000000e+30 : f32
    %13 = vector.shape_cast %12 : vector<1x8x1xi1> to vector<1x8x1xi1>
    %14 = vector.broadcast %13 : vector<1x8x1xi1> to vector<2x8x4xi1>
    %15 = vector.broadcast %cst_6 : f32 to vector<2x8x4xf32>
    %16 = arith.select %14, %9, %15 : vector<2x8x4xi1>, vector<2x8x4xf32>
    %cst_7 = arith.constant dense<0xFF800000> : vector<2x4xf32>
    %17 = vector.multi_reduction <maximumf>, %16, %cst_7 [1] : vector<2x8x4xf32> to vector<2x4xf32>
    %18 = vector.shape_cast %17 : vector<2x4xf32> to vector<2x1x4xf32>
    %19 = vector.broadcast %18 : vector<2x1x4xf32> to vector<2x8x4xf32>
    %20 = arith.subf %16, %19 : vector<2x8x4xf32>
    %21 = math.exp %20 : vector<2x8x4xf32>
    %cst_8 = arith.constant dense<0.000000e+00> : vector<2x4xf32>
    %22 = vector.multi_reduction <add>, %21, %cst_8 [1] : vector<2x8x4xf32> to vector<2x4xf32>
    %23 = vector.shape_cast %22 : vector<2x4xf32> to vector<2x1x4xf32>
    %24 = tpu.reciprocal %23 {approx = true} : vector<2x1x4xf32> -> vector<2x1x4xf32>
    %25 = vector.broadcast %24 : vector<2x1x4xf32> to vector<2x8x4xf32>
    %26 = arith.mulf %21, %25 : vector<2x8x4xf32>
    %27 = vector.shape_cast %26 : vector<2x8x4xf32> to vector<16x4xf32>
    %28 = arith.truncf %27 : vector<16x4xf32> to vector<16x4xbf16>
    %c0_9 = arith.constant 0 : index
    %c0_10 = arith.constant 0 : index
    %29 = vector.load %arg4[%c0_9, %c0_10] : memref<4x32xbf16, #tpu.memory_space<vmem>>, vector<4x32xbf16>
    %cst_11 = arith.constant dense<0.000000e+00> : vector<16x32xf32>
    %30 = tpu.matmul %28, %29, %cst_11 {dimension_numbers = #tpu.dot_dimension_numbers<[1], [0], [0], [1], [0, 0, 1, 1], [], []>} : vector<16x4xbf16>, vector<4x32xbf16>, vector<16x32xf32> -> vector<16x32xf32>
    %31 = arith.mulf %30, %7 : vector<16x32xf32>
    %32 = vector.shape_cast %31 : vector<16x32xf32> to vector<2x8x32xf32>
    %cst_12 = arith.constant dense<0.000000e+00> : vector<2x32xf32>
    %33 = vector.multi_reduction <add>, %32, %cst_12 [1] : vector<2x8x32xf32> to vector<2x32xf32>
    %c0_13 = arith.constant 0 : index
    %c0_14 = arith.constant 0 : index
    %34 = vector.load %arg5[%c0_13, %c0_14] : memref<1x32xf32, #tpu.memory_space<vmem>>, vector<1x32xf32>
    %35 = vector.broadcast %34 : vector<1x32xf32> to vector<2x32xf32>
    %36 = arith.addf %33, %35 : vector<2x32xf32>
    %37 = arith.truncf %36 : vector<2x32xf32> to vector<2x32xbf16>
    %c0_15 = arith.constant 0 : index
    %c0_16 = arith.constant 0 : index
    %38 = vector.load %arg6[%c0_15, %c0_16] : memref<32x32xbf16, #tpu.memory_space<vmem>>, vector<32x32xbf16>
    %cst_17 = arith.constant dense<0.000000e+00> : vector<2x32xf32>
    %39 = tpu.matmul %37, %38, %cst_17 {dimension_numbers = #tpu.dot_dimension_numbers<[1], [0], [0], [1], [0, 0, 1, 1], [], []>} : vector<2x32xbf16>, vector<32x32xbf16>, vector<2x32xf32> -> vector<2x32xf32>
    %c0_18 = arith.constant 0 : index
    %c0_19 = arith.constant 0 : index
    %40 = vector.load %arg7[%c0_18, %c0_19] : memref<1x32xf32, #tpu.memory_space<vmem>>, vector<1x32xf32>
    %41 = vector.broadcast %40 : vector<1x32xf32> to vector<2x32xf32>
    %42 = arith.addf %39, %41 : vector<2x32xf32>
    %cst_20 = arith.constant 0.000000e+00 : f32
    %43 = vector.broadcast %cst_20 : f32 to vector<2x32xf32>
    %44 = arith.maximumf %42, %43 : vector<2x32xf32>
    %45 = arith.addf %36, %44 : vector<2x32xf32>
    %46 = arith.truncf %45 : vector<2x32xf32> to vector<2x32xbf16>
    %c0_21 = arith.constant 0 : index
    %c0_22 = arith.constant 0 : index
    %47 = vector.load %arg8[%c0_21, %c0_22] : memref<32x1xbf16, #tpu.memory_space<vmem>>, vector<32x1xbf16>
    %cst_23 = arith.constant dense<0.000000e+00> : vector<2x1xf32>
    %48 = tpu.matmul %46, %47, %cst_23 {dimension_numbers = #tpu.dot_dimension_numbers<[1], [0], [0], [1], [0, 0, 1, 1], [], []>} : vector<2x32xbf16>, vector<32x1xbf16>, vector<2x1xf32> -> vector<2x1xf32>
    %c0_24 = arith.constant 0 : index
    %c0_25 = arith.constant 0 : index
    %49 = vector.load %arg9[%c0_24, %c0_25] : memref<1x1xf32, #tpu.memory_space<vmem>>, vector<1x1xf32>
    %50 = vector.broadcast %49 : vector<1x1xf32> to vector<2x1xf32>
    %51 = arith.addf %48, %50 : vector<2x1xf32>
    %52 = tpu.transpose %51, [1, 0] : vector<2x1xf32> -> vector<1x2xf32>
    %c0_26 = arith.constant 0 : index
    %c0_27 = arith.constant 0 : index
    %53 = vector.load %arg10[%c0_26, %c0_27] : memref<1x2xf32, #tpu.memory_space<vmem>>, vector<1x2xf32>
    tpu.vector_store %arg10[%c0_26, %c0_27], %52 {strides = array<i32>} : memref<1x2xf32, #tpu.memory_space<vmem>>, vector<1x2xf32>,
    return
  }
  func.func @transform_0(%arg0: i32) -> (i32, i32, i32) {
    %c0_i32 = arith.constant 0 : i32
    %c0_i32_0 = arith.constant 0 : i32
    %c0_i32_1 = arith.constant 0 : i32
    return %arg0, %c0_i32, %c0_i32_0 : i32, i32, i32
  }
  func.func @transform_1(%arg0: i32) -> (i32, i32) {
    %c0_i32 = arith.constant 0 : i32
    %c0_i32_0 = arith.constant 0 : i32
    %c0_i32_1 = arith.constant 0 : i32
    return %c0_i32, %c0_i32_0 : i32, i32
  }
  func.func @transform_2(%arg0: i32) -> (i32, i32) {
    %c0_i32 = arith.constant 0 : i32
    %c0_i32_0 = arith.constant 0 : i32
    %c0_i32_1 = arith.constant 0 : i32
    return %c0_i32, %c0_i32_0 : i32, i32
  }
  func.func @transform_3(%arg0: i32) -> (i32, i32) {
    %c0_i32 = arith.constant 0 : i32
    %c0_i32_0 = arith.constant 0 : i32
    %c0_i32_1 = arith.constant 0 : i32
    return %c0_i32, %c0_i32_0 : i32, i32
  }
  func.func @transform_4(%arg0: i32) -> (i32, i32) {
    %c0_i32 = arith.constant 0 : i32
    %c0_i32_0 = arith.constant 0 : i32
    %c0_i32_1 = arith.constant 0 : i32
    return %c0_i32, %c0_i32_0 : i32, i32
  }
  func.func @transform_5(%arg0: i32) -> (i32, i32) {
    %c0_i32 = arith.constant 0 : i32
    %c0_i32_0 = arith.constant 0 : i32
    %c0_i32_1 = arith.constant 0 : i32
    return %c0_i32, %c0_i32_0 : i32, i32
  }
  func.func @transform_6(%arg0: i32) -> (i32, i32) {
    %c0_i32 = arith.constant 0 : i32
    %c0_i32_0 = arith.constant 0 : i32
    %c0_i32_1 = arith.constant 0 : i32
    return %c0_i32, %c0_i32_0 : i32, i32
  }
  func.func @transform_7(%arg0: i32) -> (i32, i32) {
    %c0_i32 = arith.constant 0 : i32
    %c0_i32_0 = arith.constant 0 : i32
    %c0_i32_1 = arith.constant 0 : i32
    return %c0_i32, %c0_i32_0 : i32, i32
  }
  func.func @transform_8(%arg0: i32) -> (i32, i32) {
    %c0_i32 = arith.constant 0 : i32
    %c0_i32_0 = arith.constant 0 : i32
    %c0_i32_1 = arith.constant 0 : i32
    return %c0_i32, %c0_i32_0 : i32, i32
  }
  func.func @transform_9(%arg0: i32) -> (i32, i32) {
    %c0_i32 = arith.constant 0 : i32
    %c0_i32_0 = arith.constant 0 : i32
    return %c0_i32, %arg0 : i32, i32
  }
}

</mosaic_0001>

<bundles_post_ra>
// kernel: net_forward.1
= control target key start
LH: loop header
LB: loop body
LE: loop exit
PB: predicated region body
PF: predicated region fallthrough
CT: control target
= control target key end

     0   :  { %s1734_s0 = inlined_call_operand.vmem [shape: bf16[2,8,1024], index: 0, kind: input, shape index: {}]   ;;  %s1735_s1 = inlined_call_operand.vmem [shape: bf16[1024,36], index: 1, kind: input, shape index: {}]   ;;  %s1736_s2 = inlined_call_operand.vmem [shape: f32[1,36], index: 2, kind: input, shape index: {}]   ;;  %s1737_s3 = inlined_call_operand.vmem [shape: bf16[4,32], index: 3, kind: input, shape index: {}]   ;;  %s1738_s4 = inlined_call_operand.vmem [shape: f32[1,32], index: 4, kind: input, shape index: {}]   ;;  %s1739_s5 = inlined_call_operand.vmem [shape: bf16[32,32], index: 5, kind: input, shape index: {}]   ;;  %s1740_s6 = inlined_call_operand.vmem [shape: f32[1,32], index: 6, kind: input, shape index: {}]   ;;  %s1741_s7 = inlined_call_operand.vmem [shape: bf16[32,1], index: 7, kind: input, shape index: {}]   ;;  %s1742_s8 = inlined_call_operand.<no memory space> [shape: f32[1,1], index: 8, kind: input, shape index: {}]   ;;  %s1743_s9 = inlined_call_operand.hbm [shape: f32[1,2], index: 9, kind: output, shape index: {}]  }
   0x1   :  { %v14_v0 = vstv %s1742_s8 }
   0x2   :  { %15 = vst [vmem:[#allocation2] sm:$0x1] %v14_v0 }
   0x3   :  { %v1304_v1 = vld [vmem:[%s1735_s1 + $0x40] sm:$0xff]   ;;  %v1308_v5 = vld [vmem:[%s1735_s1 + $0x48] sm:$0xff]   ;;  %v1312_v9 = vld [vmem:[%s1735_s1 + $0x50] sm:$0xff]  }
   0x4   :  { %v1305_v2 = vld [vmem:[%s1735_s1 + $0xc0] sm:$0xff]   ;;  %1182 = vmatprep.subr.bf16.mxu0 %v1304_v1  ;;  %v1309_v6 = vld [vmem:[%s1735_s1 + $0xc8] sm:$0xff]   ;;  %v1313_v10 = vld [vmem:[%s1735_s1 + $0xd0] sm:$0xff]  }
   0x5   :  { %v1306_v3 = vld [vmem:[%s1735_s1] sm:$0xff]   ;;  %1204 = vmatprep.subr.bf16.mxu1 %v1305_v2  ;;  %v1310_v7 = vld [vmem:[%s1735_s1 + $0x8] sm:$0xff]   ;;  %v1314_v11 = vld [vmem:[%s1735_s1 + $0x10] sm:$0xff]  }
   0x6   :  { %v1307_v4 = vld [vmem:[%s1735_s1 + $0x80] sm:$0xff]   ;;  %1183 = vmatpush3.bf16.msra.mxu0 %v1306_v3  ;;  %v1311_v8 = vld [vmem:[%s1735_s1 + $0x88] sm:$0xff]   ;;  %v1315_v12 = vld [vmem:[%s1735_s1 + $0x90] sm:$0xff]  }
   0x7   :  { %1205 = vmatpush3.bf16.msra.mxu1 %v1307_v4  ;;  %1184 = vmatprep.subr.bf16.mxu0 %v1308_v5  ;;  %v1316_v13 = vld [vmem:[%s1735_s1 + $0x58] sm:$0xff]   ;;  %v1320_v17 = vld [vmem:[%s1735_s1 + $0x60] sm:$0xff]   ;;  %v1324_v21 = vld [vmem:[%s1735_s1 + $0x68] sm:$0xff]  }
   0x8   :  { %1206 = vmatprep.subr.bf16.mxu1 %v1309_v6  ;;  %v1317_v14 = vld [vmem:[%s1735_s1 + $0xd8] sm:$0xff]   ;;  %v1321_v18 = vld [vmem:[%s1735_s1 + $0xe0] sm:$0xff]   ;;  %v1325_v22 = vld [vmem:[%s1735_s1 + $0xe8] sm:$0xff]  }
   0x9   :  { %v1318_v15 = vld [vmem:[%s1735_s1 + $0x18] sm:$0xff]   ;;  %v1322_v19 = vld [vmem:[%s1735_s1 + $0x20] sm:$0xff]   ;;  %v1326_v23 = vld [vmem:[%s1735_s1 + $0x28] sm:$0xff]  }
   0xa   :  { %1185 = vmatpush3.bf16.msra.mxu0 %v1310_v7  ;;  %v1319_v16 = vld [vmem:[%s1735_s1 + $0x98] sm:$0xff]   ;;  %v1323_v20 = vld [vmem:[%s1735_s1 + $0xa0] sm:$0xff]   ;;  %v1327_v24 = vld [vmem:[%s1735_s1 + $0xa8] sm:$0xff]  }
   0xb   :  { %1207 = vmatpush3.bf16.msra.mxu1 %v1311_v8  ;;  %1186 = vmatprep.subr.bf16.mxu0 %v1312_v9  ;;  %v1328_v25 = vld [vmem:[%s1735_s1 + $0x70] sm:$0xff]   ;;  %v1332_v29 = vld [vmem:[%s1735_s1 + $0x78] sm:$0xff]   ;;  %v36_v33 = vld [vmem:[%s1734_s0] sm:$0xff] }
   0xc   :  { %1208 = vmatprep.subr.bf16.mxu1 %v1313_v10  ;;  %v1329_v26 = vld [vmem:[%s1735_s1 + $0xf0] sm:$0xff]   ;;  %v1333_v30 = vld [vmem:[%s1735_s1 + $0xf8] sm:$0xff]   ;;  %v40_v34 = vld [vmem:[%s1734_s0 + $0x20] sm:$0xff] }
   0xd   :  { %v1330_v27 = vld [vmem:[%s1735_s1 + $0x30] sm:$0xff]   ;;  %v1334_v31 = vld [vmem:[%s1735_s1 + $0x38] sm:$0xff]   ;;  %v37_v35 = vld [vmem:[%s1734_s0 + $0x8] sm:$0xff]  ;;  %v1100_v36 = vcombine.low %v36_v33, %v40_v34  ;;  %v1101_v37 = vcombine.high %v36_v33, %v40_v34 }
   0xe   :  { %1187 = vmatpush3.bf16.msra.mxu0 %v1314_v11  ;;  %v1331_v28 = vld [vmem:[%s1735_s1 + $0xb0] sm:$0xff]   ;;  %v1335_v32 = vld [vmem:[%s1735_s1 + $0xb8] sm:$0xff]   ;;  %v41_v38 = vld [vmem:[%s1734_s0 + $0x28] sm:$0xff] }
   0xf   :  { %1209 = vmatpush3.bf16.msra.mxu1 %v1315_v12  ;;  %1188 = vmatprep.subr.bf16.mxu0 %v1316_v13  ;;  %v1102_v39 = vcombine.low %v37_v35, %v41_v38  ;;  %v1103_v40 = vcombine.high %v37_v35, %v41_v38  ;;  %v1336_v41 = vld [vmem:[%s1735_s1 + $0x140] sm:$0xff]   ;;  %v1340_v45 = vld [vmem:[%s1735_s1 + $0x148] sm:$0xff]   ;;  %v1344_v49 = vld [vmem:[%s1735_s1 + $0x150] sm:$0xff]  }
  0x10   :  { %1210 = vmatprep.subr.bf16.mxu1 %v1317_v14  ;;  %635 = vmatprep.mubr.bf16.mxu0 %v1101_v37  ;;  %v1337_v42 = vld [vmem:[%s1735_s1 + $0x1c0] sm:$0xff]   ;;  %v1341_v46 = vld [vmem:[%s1735_s1 + $0x1c8] sm:$0xff]   ;;  %v1345_v50 = vld [vmem:[%s1735_s1 + $0x1d0] sm:$0xff]  }
  0x11   :  { %676 = vmatprep.mubr.bf16.mxu1 %v1103_v40  ;;  %v1338_v43 = vld [vmem:[%s1735_s1 + $0x100] sm:$0xff]   ;;  %v1342_v47 = vld [vmem:[%s1735_s1 + $0x108] sm:$0xff]   ;;  %v1346_v51 = vld [vmem:[%s1735_s1 + $0x110] sm:$0xff]  }
  0x12   :  { %1189 = vmatpush3.bf16.msra.mxu0 %v1318_v15  ;;  %v1339_v44 = vld [vmem:[%s1735_s1 + $0x180] sm:$0xff]   ;;  %v1343_v48 = vld [vmem:[%s1735_s1 + $0x188] sm:$0xff]   ;;  %v1347_v52 = vld [vmem:[%s1735_s1 + $0x190] sm:$0xff]  }
  0x13   :  { %1211 = vmatpush3.bf16.msra.mxu1 %v1319_v16  ;;  %1190 = vmatprep.subr.bf16.mxu0 %v1320_v17  ;;  %v1348_v53 = vld [vmem:[%s1735_s1 + $0x158] sm:$0xff]   ;;  %v1352_v57 = vld [vmem:[%s1735_s1 + $0x160] sm:$0xff]   ;;  %v1356_v61 = vld [vmem:[%s1735_s1 + $0x168] sm:$0xff]  }
  0x14   :  { %1212 = vmatprep.subr.bf16.mxu1 %v1321_v18  ;;  %v1349_v54 = vld [vmem:[%s1735_s1 + $0x1d8] sm:$0xff]   ;;  %v1353_v58 = vld [vmem:[%s1735_s1 + $0x1e0] sm:$0xff]   ;;  %v1357_v62 = vld [vmem:[%s1735_s1 + $0x1e8] sm:$0xff]  }
  0x15   :  { %v1350_v55 = vld [vmem:[%s1735_s1 + $0x118] sm:$0xff]   ;;  %v1354_v59 = vld [vmem:[%s1735_s1 + $0x120] sm:$0xff]   ;;  %v1358_v63 = vld [vmem:[%s1735_s1 + $0x128] sm:$0xff]  }
  0x16   :  { %1191 = vmatpush3.bf16.msra.mxu0 %v1322_v19  ;;  %v1351_v56 = vld [vmem:[%s1735_s1 + $0x198] sm:$0xff]   ;;  %v1355_v60 = vld [vmem:[%s1735_s1 + $0x1a0] sm:$0xff]   ;;  %v1359_v0 = vld [vmem:[%s1735_s1 + $0x1a8] sm:$0xff]  }
  0x17   :  { %1213 = vmatpush3.bf16.msra.mxu1 %v1323_v20  ;;  %1192 = vmatprep.subr.bf16.mxu0 %v1324_v21  ;;  %v1360_v1 = vld [vmem:[%s1735_s1 + $0x170] sm:$0xff]   ;;  %v1364_v5 = vld [vmem:[%s1735_s1 + $0x178] sm:$0xff]  }
  0x18   :  { %1214 = vmatprep.subr.bf16.mxu1 %v1325_v22  ;;  %v1361_v2 = vld [vmem:[%s1735_s1 + $0x1f0] sm:$0xff]   ;;  %v1365_v6 = vld [vmem:[%s1735_s1 + $0x1f8] sm:$0xff]  }
  0x19   :  { %v1362_v3 = vld [vmem:[%s1735_s1 + $0x130] sm:$0xff]   ;;  %v1366_v7 = vld [vmem:[%s1735_s1 + $0x138] sm:$0xff]  }
  0x1a   :  { %1193 = vmatpush3.bf16.msra.mxu0 %v1326_v23  ;;  %v1363_v4 = vld [vmem:[%s1735_s1 + $0x1b0] sm:$0xff]   ;;  %v1367_v8 = vld [vmem:[%s1735_s1 + $0x1b8] sm:$0xff]  }
  0x1b   :  { %1215 = vmatpush3.bf16.msra.mxu1 %v1327_v24  ;;  %1194 = vmatprep.subr.bf16.mxu0 %v1328_v25  ;;  %v38_v9 = vld [vmem:[%s1734_s0 + $0x10] sm:$0xff]  ;;  %v39_v13 = vld [vmem:[%s1734_s0 + $0x18] sm:$0xff] }
  0x1c   :  { %1216 = vmatprep.subr.bf16.mxu1 %v1329_v26  ;;  %v42_v10 = vld [vmem:[%s1734_s0 + $0x30] sm:$0xff]  ;;  %v43_v14 = vld [vmem:[%s1734_s0 + $0x38] sm:$0xff] }
  0x1d   :  { %v1104_v11 = vcombine.low %v38_v9, %v42_v10  ;;  %v1105_v12 = vcombine.high %v38_v9, %v42_v10  ;;  %v1106_v15 = vcombine.low %v39_v13, %v43_v14  ;;  %v1107_v16 = vcombine.high %v39_v13, %v43_v14 }
  0x1e   :  { %1195 = vmatpush3.bf16.msra.mxu0 %v1330_v27 }
  0x1f   :  { %1217 = vmatpush3.bf16.msra.mxu1 %v1331_v28  ;;  %1196 = vmatprep.subr.bf16.mxu0 %v1332_v29 }
  0x20   :  { %1218 = vmatprep.subr.bf16.mxu1 %v1333_v30 }
  0x22   :  { %1197 = vmatpush3.bf16.msra.mxu0 %v1334_v31 }
  0x23   :  { %1219 = vmatpush3.bf16.msra.mxu1 %v1335_v32  ;;  %1226 = vmatprep.subr.bf16.mxu0 %v1336_v41 }
  0x24   :  { %1248 = vmatprep.subr.bf16.mxu1 %v1337_v42 }
  0x25   :  { %636 = vmatmul.mubr.bf16.vlgmr.msra.gmra.mrb[0].mxu0 %v1100_v36 }
  0x26   :  { %677 = vmatmul.mubr.bf16.vlgmr.msra.gmra.mrb[0].mxu1 %v1102_v39  ;;  %1227 = vmatpush3.bf16.msra.mxu0 %v1338_v43 }
  0x27   :  { %1249 = vmatpush3.bf16.msra.mxu1 %v1339_v44  ;;  %1228 = vmatprep.subr.bf16.mxu0 %v1340_v45 }
  0x28   :  { %1250 = vmatprep.subr.bf16.mxu1 %v1341_v46  ;;  %717 = vmatprep.mubr.bf16.mxu0 %v1105_v12 }
  0x29   :  { %758 = vmatprep.mubr.bf16.mxu1 %v1107_v16 }
  0x2a   :  { %1229 = vmatpush3.bf16.msra.mxu0 %v1342_v47 }
  0x2b   :  { %1251 = vmatpush3.bf16.msra.mxu1 %v1343_v48  ;;  %1230 = vmatprep.subr.bf16.mxu0 %v1344_v49 }
  0x2c   :  { %1252 = vmatprep.subr.bf16.mxu1 %v1345_v50 }
  0x2e   :  { %1231 = vmatpush3.bf16.msra.mxu0 %v1346_v51 }
  0x2f   :  { %1253 = vmatpush3.bf16.msra.mxu1 %v1347_v52  ;;  %1232 = vmatprep.subr.bf16.mxu0 %v1348_v53 }
  0x30   :  { %1254 = vmatprep.subr.bf16.mxu1 %v1349_v54 }
  0x32   :  { %1233 = vmatpush3.bf16.msra.mxu0 %v1350_v55 }
  0x33   :  { %1255 = vmatpush3.bf16.msra.mxu1 %v1351_v56  ;;  %1234 = vmatprep.subr.bf16.mxu0 %v1352_v57 }
  0x34   :  { %1256 = vmatprep.subr.bf16.mxu1 %v1353_v58 }
  0x36   :  { %1235 = vmatpush3.bf16.msra.mxu0 %v1354_v59 }
  0x37   :  { %1257 = vmatpush3.bf16.msra.mxu1 %v1355_v60  ;;  %1236 = vmatprep.subr.bf16.mxu0 %v1356_v61 }
  0x38   :  { %1258 = vmatprep.subr.bf16.mxu1 %v1357_v62 }
  0x3a   :  { %1237 = vmatpush3.bf16.msra.mxu0 %v1358_v63 }
  0x3b   :  { %1259 = vmatpush3.bf16.msra.mxu1 %v1359_v0  ;;  %1238 = vmatprep.subr.bf16.mxu0 %v1360_v1 }
  0x3c   :  { %1260 = vmatprep.subr.bf16.mxu1 %v1361_v2 }
  0x3e   :  { %1239 = vmatpush3.bf16.msra.mxu0 %v1362_v3 }
  0x3f   :  { %1261 = vmatpush3.bf16.msra.mxu1 %v1363_v4  ;;  %1240 = vmatprep.subr.bf16.mxu0 %v1364_v5 }
  0x40   :  { %1262 = vmatprep.subr.bf16.mxu1 %v1365_v6 }
  0x42   :  { %1241 = vmatpush3.bf16.msra.mxu0 %v1366_v7 }
  0x43   :  { %1263 = vmatpush3.bf16.msra.mxu1 %v1367_v8 }
  0x45   :  { %718 = vmatmul.mubr.bf16.vlgmr.msra.gmra.mrb[4].mxu0 %v1104_v11 }
  0x46   :  { %16 = vsyncpa [#allocation4], 0  ;;  %759 = vmatmul.mubr.bf16.vlgmr.msra.gmra.mrb[4].mxu1 %v1106_v15  ;;  %v814_v17 = vld [vmem:[%s1737_s3] sm:$0x3]  ;;  %vm822_vm0 = vcmask 1041408   ;;  %v1404_v18 = vmov 0.0   ;;  %v767_v37 = vlaneseq }
  0x47   :  { %1278 = vmatprep.subr.bf16.mxu0 %v1404_v18  ;;  %v824_v19 = vsel %vm822_vm0, %v814_v17, 0  ;;  %vm1405_vm1 = vmmov 0   ;;  %1284 = vmatprep.subr.bf16.mxu1 %v1404_v18  ;;  %v1099_v22 = vld [vmem:[%s1736_s2] ss:$0 sm:$0xff]  ;;  %vm774_vm3 = vcmask 294144   ;;  %s1406_s2 = smov 96  }
  0x48   :  { %1280 = vmatprep.mubr.msk.bf16.mxu0 %vm1405_vm1, %v1404_v18  ;;  %1279 = vmatpush3.bf16.msra.mxu0 %v824_v19  ;;  %v768_v41 = vshrl.u32 %v767_v37, 7  ;;  %vm818_vm4 = vcmask 31744   ;;  %vm869_vm5 = vcmask 261120   ;;  %vm911_vm6 = vcmask 1041409  }
  0x49   :  { %1288 = vmatprep.mubr.msk.bf16.mxu1 %vm1405_vm1, %v1404_v18  ;;  %1292 = vmatprep.subr.bf16.mxu0 %v1404_v18  ;;  %vm1083_vm7 = vcmask 8192  }
  0x4a   :  { %vm769_vm2 = vcmp.lt.s32.totalorder %v768_v41, 3 }
  0xf8   :  { %v1198_v20 = vpop.f32.mrb[0].mxu0 }
  0xf9   :  { %v1220_v21 = vpop.f32.mrb[0].mxu1  ;;  %v1199_v23 = vpop.f32.mrb[1].mxu0 }
  0xfa   :  { %v1200_v24 = vadd.f32 %v1199_v23, %v1198_v20  ;;  %v1221_v25 = vpop.f32.mrb[1].mxu1  ;;  %v1201_v26 = vpop.f32.mrb[2].mxu0 }
  0xfb   :  { %v1222_v27 = vadd.f32 %v1221_v25, %v1220_v21  ;;  %v1223_v28 = vpop.f32.mrb[2].mxu1  ;;  %v1202_v29 = vpop.f32.mrb[3].mxu0 }
  0xfc   :  { %v638_v30 = vadd.f32 %v1200_v24, %v1099_v22  ;;  %v1203_v31 = vadd.f32 %v1202_v29, %v1201_v26  ;;  %v1224_v32 = vpop.f32.mrb[3].mxu1 }
  0xfd   :  { %v1225_v33 = vadd.f32 %v1224_v32, %v1223_v28 }
  0xfe   :  { %v679_v34 = vadd.f32 %v1222_v27, %v638_v30  ;;  %v641_v35 = vadd.f32 %v1203_v31, %v1099_v22 }
 0x100   :  { %v682_v36 = vadd.f32 %v1225_v33, %v641_v35  ;;  %v1369_v35 = vld [vmem:[%s1739_s5 + $0x8] sm:$0xff]  }
 0x118   :  { %v1242_v38 = vpop.f32.mrb[4].mxu0 }
 0x119   :  { %v1264_v39 = vpop.f32.mrb[4].mxu1  ;;  %v1243_v40 = vpop.f32.mrb[5].mxu0 }
 0x11a   :  { %v1244_v42 = vadd.f32 %v1243_v40, %v1242_v38  ;;  %v1265_v43 = vpop.f32.mrb[5].mxu1  ;;  %v1245_v44 = vpop.f32.mrb[6].mxu0 }
 0x11b   :  { %v1266_v45 = vadd.f32 %v1265_v43, %v1264_v39  ;;  %v1267_v46 = vpop.f32.mrb[6].mxu1  ;;  %v1246_v47 = vpop.f32.mrb[7].mxu0 }
 0x11c   :  { %v720_v48 = vadd.f32 %v1244_v42, %v679_v34  ;;  %v1247_v49 = vadd.f32 %v1246_v47, %v1245_v44  ;;  %v1268_v50 = vpop.f32.mrb[7].mxu1  ;;  %v1368_v34 = vld [vmem:[%s1739_s5] sm:$0xff]  }
 0x11d   :  { %v1269_v51 = vadd.f32 %v1268_v50, %v1267_v46  ;;  %1285 = vmatpush3.bf16.msra.mxu1 %v1368_v34 }
 0x11e   :  { %v761_v52 = vadd.f32 %v1266_v45, %v720_v48  ;;  %v723_v53 = vadd.f32 %v1247_v49, %v682_v36  ;;  %1286 = vmatprep.subr.bf16.mxu1 %v1404_v18 }
 0x120   :  { %v772_v54 = vsel %vm769_vm2, %v761_v52, -1e+30  ;;  %v764_v55 = vadd.f32 %v1269_v51, %v723_v53 }
 0x121   :  { %v775_v56 = vsel %vm774_vm3, %v772_v54, -inf  ;;  %1287 = vmatpush3.bf16.msra.mxu1 %v1369_v35 }
 0x122   :  { %v776_v57 = vrot.slane %v775_v56, 4  ;;  %v773_v58 = vsel %vm769_vm2, %v764_v55, -1e+30 }
 0x123   :  { %v782_v59 = vsel %vm774_vm3, %v773_v58, -inf }
 0x124   :  { %v777_v60 = vmax.f32 %v775_v56, %v776_v57  ;;  %v783_v61 = vrot.slane %v782_v59, 4 }
 0x126   :  { %v778_v62 = vrot.slane %v777_v60, 2  ;;  %v784_v63 = vmax.f32 %v782_v59, %v783_v61 }
 0x128   :  { %v779_v0 = vmax.f32 %v777_v60, %v778_v62  ;;  %v785_v1 = vrot.slane %v784_v63, 2 }
 0x12a   :  { %v780_v2 = vrot.slane %v779_v0, 1  ;;  %v786_v3 = vmax.f32 %v784_v63, %v785_v1 }
 0x12c   :  { %v781_v4 = vmax.f32 %v779_v0, %v780_v2  ;;  %v787_v5 = vrot.slane %v786_v3, 1  ;;  %v1370_v2 = vld [vmem:[%s1741_s7] sm:$0xff]  }
 0x12e   :  { %v789_v6 = vsub.f32 %v772_v54, %v781_v4  ;;  %v788_v7 = vmax.f32 %v786_v3, %v787_v5  ;;  %v1371_v3 = vld [vmem:[%s1741_s7 + $0x8] sm:$0xff]   ;;  %v1174_v4 = vld [vmem:[%s1740_s6] ss:$0 sm:$0xff]  ;;  %s1407_s6 = smov [#allocation3]  }
 0x12f   :  { %s1091_s7 = sshll.u32 %s1407_s6, 4  ;;  %s1092_s7 = int_to_ptr.vmem [resolvable:$true] %s1091_s7 }
 0x130   :  { %v791_v8 = vmul.f32 1.442695, %v789_v6  ;;  %v790_v9 = vsub.f32 %v773_v58, %v788_v7  ;;  %s1380_s12 = scalar_lea.vmem %s1092_s7, 16  ;;  %s1384_s13 = scalar_lea.vmem %s1092_s7, 32 }
 0x131   :  { %p1381_p0 = scmp.ne.s32.totalorder %s1092_s7, %s1380_s12  ;;  %p1385_p1 = scmp.lt.s32.totalorder %s1092_s7, %s1092_s7 }
 0x132   :  { %1372 = vpow2.f32 %v791_v8  ;;  %v793_v10 = vmul.f32 1.442695, %v790_v9  ;;  %p1386_p2 = scmp.lt.s32.totalorder %s1384_s13, %s1380_s12 }
 0x134   :  { %1374 = vpow2.f32 %v793_v10  ;;  %p1387_p3 = por %p1386_p2, %p1385_p1 }
 0x136   :  { %p1388_p4 = pnand %p1387_p3, %p1381_p0 }
 0x13c   :  { %v1373_v11 = vpop.eup %1372 }
 0x13d   :  { %v795_v12 = vsel %vm774_vm3, %v1373_v11, 0.0 }
 0x13e   :  { %v1375_v13 = vpop.eup %1374  ;;  %v796_v14 = vrot.slane %v795_v12, 4 }
 0x13f   :  { %v802_v15 = vsel %vm774_vm3, %v1375_v13, 0.0 }
 0x140   :  { %v797_v16 = vadd.f32 %v796_v14, %v795_v12  ;;  %v803_v17 = vrot.slane %v802_v15, 4 }
 0x142   :  { %v798_v19 = vrot.slane %v797_v16, 2  ;;  %v804_v20 = vadd.f32 %v803_v17, %v802_v15 }
 0x144   :  { %v799_v21 = vadd.f32 %v798_v19, %v797_v16  ;;  %v805_v22 = vrot.slane %v804_v20, 2 }
 0x146   :  { %v800_v23 = vrot.slane %v799_v21, 1  ;;  %v806_v24 = vadd.f32 %v805_v22, %v804_v20 }
 0x148   :  { %v801_v25 = vadd.f32 %v800_v23, %v799_v21  ;;  %v807_v26 = vrot.slane %v806_v24, 1  ;;  %v1178_v21 = vld [vmem:[#allocation2] ss:$0 sm:$0xff] }
 0x14a   :  { %v808_v27 = vadd.f32 %v807_v26, %v806_v24  ;;  %1376 = vrcp.f32 %v801_v25 }
 0x14c   :  { %1378 = vrcp.f32 %v808_v27 }
 0x154   :  { %v1377_v28 = vpop.eup %1376 }
 0x155   :  { %v811_v30 = vmul.f32 %v1377_v28, %v1373_v11 }
 0x156   :  { %v1379_v29 = vpop.eup %1378 }
 0x157   :  { %v812_v31 = vmul.f32 %v1379_v29, %v1375_v13 }
 0x159   :  { %v813_v32 = vpack.c.bf16 %v812_v31, %v811_v30 }
 0x15b   :  { %816 = vrot.lane.b32.xlu0 %v813_v32, %s1406_s2 }
 0x1cd   :  { %v817_v33 = vpop.permute.xlu0 %816 }
 0x1ce   :  { %1281 = vmatmul.mubr.msk.bf16.vlgmr.msra.gmra.mrb[8].mxu0 %vm818_vm4, %v817_v33 }
 0x1cf   :  { %1296 = vmatprep.mubr.msk.bf16.mxu0 %vm1405_vm1, %v1404_v18  ;;  %1293 = vmatpush3.bf16.msra.mxu0 %v1370_v2 }
 0x1d0   :  { %1294 = vmatprep.subr.bf16.mxu0 %v1404_v18 }
 0x1d3   :  { %1295 = vmatpush3.bf16.msra.mxu0 %v1371_v3 }
 0x2a1   :  { %v860_v36 = vpop.f32.mrb[8].mxu0 }
 0x2a2   :  { %v867_v37 = vmul.f32 %v860_v36, %v761_v52  ;;  %v1282_v38 = vpop.f32.mrb[9].mxu0  ;;  %v1173_v52 = vld [vmem:[%s1738_s4] ss:$0 sm:$0xff] }
 0x2a3   :  { %v863_v39 = vpop.f32.mrb[10].mxu0 }
 0x2a4   :  { %v870_v40 = vsel %vm869_vm5, %v867_v37, 0.0  ;;  %v868_v41 = vmul.f32 %v863_v39, %v764_v55  ;;  %v1283_v42 = vpop.f32.mrb[11].mxu0 }
 0x2a5   :  { %v871_v43 = vrot.slane %v870_v40, 4 }
 0x2a6   :  { %v877_v44 = vsel %vm869_vm5, %v868_v41, 0.0 }
 0x2a7   :  { %v872_v45 = vadd.f32 %v871_v43, %v870_v40  ;;  %v878_v46 = vrot.slane %v877_v44, 4 }
 0x2a9   :  { %v873_v47 = vrot.slane %v872_v45, 2  ;;  %v879_v48 = vadd.f32 %v878_v46, %v877_v44 }
 0x2ab   :  { %v874_v49 = vadd.f32 %v873_v47, %v872_v45  ;;  %v880_v50 = vrot.slane %v879_v48, 2 }
 0x2ad   :  { %v875_v51 = vrot.slane %v874_v49, 1  ;;  %v881_v53 = vadd.f32 %v880_v50, %v879_v48 }
 0x2af   :  { %v876_v54 = vadd.f32 %v875_v51, %v874_v49  ;;  %v882_v56 = vrot.slane %v881_v53, 1 }
 0x2b1   :  { %v891_v57 = vadd.f32 %v1173_v52, %v876_v54  ;;  %v883_v55 = vadd.f32 %v882_v56, %v881_v53 }
 0x2b3   :  { %v892_v58 = vadd.f32 %v1173_v52, %v883_v55  ;;  %v893_v59 = vpack.c.bf16 %v891_v57, %v891_v57 }
 0x2b5   :  { %v894_v60 = vpack.c.bf16 %v892_v58, %v892_v58  ;;  %v908_v62 = vunpack.c.l.b16 %v893_v59 }
 0x2b7   :  { %v909_v61 = vunpack.c.l.b16 %v894_v60 }
 0x2b9   :  { %v910_v63 = vrot.slane %v909_v61, 7 }
 0x2bb   :  { %v912_v0 = vsel %vm911_vm6, %v910_v63, %v908_v62 }
 0x2bc   :  { %v913_v1 = vpack.c.b16 %v912_v0, %v912_v0 }
 0x2be   :  { %1289 = vmatmul.mubr.msk.bf16.vlgmr.msra.gmra.mrb[8].mxu1 %vm869_vm5, %v913_v1 }
 0x391   :  { %v963_v5 = vpop.f32.mrb[8].mxu1 }
 0x392   :  { %v964_v6 = vadd.f32 %v1174_v4, %v963_v5  ;;  %v1290_v7 = vpop.f32.mrb[9].mxu1 }
 0x393   :  { %v966_v8 = vpop.f32.mrb[10].mxu1 }
 0x394   :  { %v969_v9 = vmax.f32 %v964_v6, 0.0  ;;  %v1291_v10 = vpop.f32.mrb[11].mxu1 }
 0x396   :  { %v971_v11 = vrot.slane %v969_v9, 1  ;;  %v974_v12 = vadd.f32 %v969_v9, %v891_v57 }
 0x398   :  { %v975_v13 = vadd.f32 %v971_v11, %v892_v58  ;;  %v976_v14 = vpack.c.bf16 %v974_v12, %v974_v12 }
 0x39a   :  { %v977_v18 = vpack.c.bf16 %v975_v13, %v975_v13  ;;  %v991_v16 = vunpack.c.l.b16 %v976_v14 }
 0x39c   :  { %v992_v15 = vunpack.c.l.b16 %v977_v18 }
 0x39e   :  { %v993_v17 = vrot.slane %v992_v15, 7 }
 0x3a0   :  { %v994_v19 = vsel %vm911_vm6, %v993_v17, %v991_v16 }
 0x3a1   :  { %v995_v20 = vpack.c.b16 %v994_v19, %v994_v19 }
 0x3a3   :  { %1297 = vmatmul.mubr.msk.bf16.vlgmr.msra.gmra.mrb[12].mxu0 %vm869_vm5, %v995_v20 }
 0x476   :  { %v1045_v22 = vpop.f32.mrb[12].mxu0 }
 0x477   :  { %v1046_v23 = vadd.f32 %v1178_v21, %v1045_v22  ;;  %v1298_v24 = vpop.f32.mrb[13].mxu0 }
 0x478   :  { %v1048_v25 = vpop.f32.mrb[14].mxu0 }
 0x479   :  { %1051 = vxpose.xlu0.b32.start.end [1/1] (short) (narrow) %v1046_v23, 8  ;;  %v1299_v26 = vpop.f32.mrb[15].mxu0 }
 0x4f9   :  { %v1067_v27 = vpop.trf.xlu0 }
 0x4fa   :  { %1084 = vst.msk [vmem:[#allocation3] sm:$0x1] %vm1083_vm7, %v1067_v27 }
 0x4fb   :  { %1391 = shalt.err (!%p1388_p4)
}
 0x4fc   :  { %s1392_s16 = scalar_lea.hbm %s1743_s9, 16 }
 0x4fd   :  { %p1393_p5 = scmp.ne.s32.totalorder %s1743_s9, %s1392_s16  ;;  %p1396_p6 = scmp.lt.u32.totalorder %s1392_s16, %s1743_s9 }
 0x4ff   :  { %p1398_p7 = pnand %p1396_p6, %p1393_p5 }
 0x501   :  { %1401 = shalt.err (!%p1398_p7)
}
 0x502   :  { %1094 = dma.vmem_to_hbm [thread:$0]  %s1092_s7, 16, %s1743_s9, [#allocation4]  }
 0x503   :  { %1402 = dma.done.wait [#allocation4], 16  }
 0x504   :  { %1403 = vsyncadd [#allocation4], 4294967280 }
 0x505   :  { %1098 = vsyncpa [#allocation4], 1 }

</bundles_post_ra>
